<compile_context>
chip_gen: v5e
topology: v5e:2x2
jax: 0.10.0
libtpu: 0.0.40
codegen_flags: <defaults>
</compile_context>

<pallas_src>
import math
import functools

import jax
import jax.numpy as jnp
from jax.experimental import pallas as pl
from jax.experimental.pallas import tpu as pltpu


def _round_up(x, m):
    return ((x + m - 1) // m) * m


def _sublane_pack(dtype):
    # Minimum sublane multiple for dense vreg packing per dtype width.
    return {4: 8, 2: 16, 1: 32}.get(jnp.dtype(dtype).itemsize, 8)


def _temporal_decay_kernel(x_ref, wt_ref, b_ref, o_ref):
    # x_ref: (tb, Kp)   wt_ref: (Kp, tn)   b_ref: (1, tn)   o_ref: (tb, tn)
    y = jnp.dot(x_ref[...], wt_ref[...], preferred_element_type=jnp.float32)
    y = y + b_ref[...]                    # broadcast bias over batch rows
    gamma = jnp.maximum(y, 0.0)           # relu
    o_ref[...] = jnp.exp(-gamma).astype(o_ref.dtype)


@functools.partial(jax.jit, static_argnames=("block_b", "block_n"))
def _temporal_decay_padded(xp, wtp, bp, *, block_b, block_n):
    Bp, Kp = xp.shape
    _, Np = wtp.shape
    grid = (Bp // block_b, Np // block_n)

    itemsize = xp.dtype.itemsize
    cost = pl.CostEstimate(
        flops=2 * Bp * Kp * Np,
        transcendentals=Bp * Np,
        bytes_accessed=(xp.size + wtp.size + bp.size + Bp * Np) * itemsize,
    )

    return pl.pallas_call(
        _temporal_decay_kernel,
        out_shape=jax.ShapeDtypeStruct((Bp, Np), xp.dtype),
        grid_spec=pltpu.PrefetchScalarGridSpec(
            num_scalar_prefetch=0,
            grid=grid,
            in_specs=[
                pl.BlockSpec((block_b, Kp), lambda i, j: (i, 0)),   # x tile
                pl.BlockSpec((Kp, block_n), lambda i, j: (0, j)),   # W^T tile
                pl.BlockSpec((1, block_n), lambda i, j: (0, j)),    # bias tile
            ],
            out_specs=pl.BlockSpec((block_b, block_n), lambda i, j: (i, j)),
        ),
        compiler_params=pltpu.CompilerParams(
            dimension_semantics=("parallel", "parallel"),
        ),
        cost_estimate=cost,
    )(xp, wtp, bp)


def temporal_decay(x, W, b, diag=False, block_b=512, block_n=512):
    """gamma = exp(-relu(x @ W^T + b)).

    x: (B, in_dim)   W: (out_dim, in_dim)   b: (out_dim,)
    diag=True applies the BRITS identity mask to W (requires in_dim == out_dim).
    For per-time-step RNN use, flatten (T, B, in_dim) -> (T*B, in_dim) and call once.
    """
    B, in_dim = x.shape
    out_dim, in_dim_w = W.shape
    assert in_dim == in_dim_w

    if diag:
        assert in_dim == out_dim
        W = W * jnp.eye(in_dim, dtype=W.dtype)   # parameter glue, not hot-path

    # One-time wrapper glue: transpose W, pad K/N to lane multiples of 128,
    # pad batch to a dtype-aware sublane-aligned tile.
    sub = _sublane_pack(x.dtype)
    Kp = _round_up(in_dim, 128)
    Np = _round_up(out_dim, 128)

    block_n = min(_round_up(block_n, 128), Np)
    if Np % block_n != 0:
        block_n = Np                               # small layers: keep full N resident

    block_b = max(sub, (block_b // sub) * sub)
    block_b = min(block_b, _round_up(B, sub))      # don't over-pad tiny batches
    Bp = _round_up(B, block_b)

    xp = jnp.pad(x, ((0, Bp - B), (0, Kp - in_dim)))
    wtp = jnp.pad(W.T.astype(x.dtype), ((0, Kp - in_dim), (0, Np - out_dim)))
    bp = jnp.pad(b.astype(x.dtype), (0, Np - out_dim)).reshape(1, Np)

    out = _temporal_decay_padded(xp, wtp, bp, block_b=block_b, block_n=block_n)
    return out[:B, :out_dim]


def temporal_decay_ref(x, W, b, diag=False):
    Weff = W * jnp.eye(W.shape[1], dtype=W.dtype) if diag else W
    gamma = jnp.maximum(x @ Weff.T + b, 0.0)
    return jnp.exp(-gamma)


if __name__ == "__main__":
    key = jax.random.PRNGKey(0)
    k_x, k_w, k_b, k_x2 = jax.random.split(key, 4)

    batch = 8
    input_dim = 32
    output_dim = 32   # == input_dim so the diag variant is also exercised

    # Deterministic init mirroring reset_parameters(): U(-stdv, stdv), stdv = 1/sqrt(output_dim)
    stdv = 1.0 / math.sqrt(output_dim)
    W = jax.random.uniform(k_w, (output_dim, input_dim), jnp.float32, -stdv, stdv)
    b = jax.random.uniform(k_b, (output_dim,), jnp.float32, -stdv, stdv)

    # Time deltas are non-negative in BRITS, but the kernel handles any real x.
    x = jax.random.uniform(k_x, (batch, input_dim), jnp.float32, 0.0, 5.0)

    # diag=False
    out = jax.block_until_ready(temporal_decay(x, W, b, diag=False))
    ref = temporal_decay_ref(x, W, b, diag=False)
    assert out.shape == (batch, output_dim)
    assert jnp.allclose(out, ref, atol=1e-5, rtol=1e-5)

    # diag=True
    out_diag = jax.block_until_ready(temporal_decay(x, W, b, diag=True))
    ref_diag = temporal_decay_ref(x, W, b, diag=True)
    assert jnp.allclose(out_diag, ref_diag, atol=1e-5, rtol=1e-5)

    # Ragged batch (not a multiple of the tile) exercises the padding path.
    x2 = jax.random.uniform(k_x2, (10, input_dim), jnp.float32, 0.0, 5.0)
    out2 = jax.block_until_ready(temporal_decay(x2, W, b, diag=False))
    ref2 = temporal_decay_ref(x2, W, b, diag=False)
    assert out2.shape == (10, output_dim)
    assert jnp.allclose(out2, ref2, atol=1e-5, rtol=1e-5)

    print("KERNEL_OK")
</pallas_src>

<mosaic_0001>
module attributes {stable_mosaic.version = 11 : i64} {
  func.func @_temporal_decay_kernel(%arg0: i32, %arg1: i32, %arg2: memref<8x128xf32, #tpu.memory_space<vmem>>, %arg3: memref<128x128xf32, #tpu.memory_space<vmem>>, %arg4: memref<1x128xf32, #tpu.memory_space<vmem>>, %arg5: memref<8x128xf32, #tpu.memory_space<vmem>>) attributes {dimension_semantics = [#tpu.dimension_semantics<parallel>, #tpu.dimension_semantics<parallel>], iteration_bounds = array<i64: 1, 1>, scalar_prefetch = 0 : i64, scratch_operands = 0 : i64, tpu.core_type = #tpu.core_type<tc>, window_params = [{transform_indices = @transform_0, window_bounds = array<i64: 8, 128>}, {transform_indices = @transform_1, window_bounds = array<i64: 128, 128>}, {transform_indices = @transform_2, window_bounds = array<i64: 1, 128>}, {transform_indices = @transform_3, window_bounds = array<i64: 8, 128>}]} {
    %c0 = arith.constant 0 : index
    %c0_0 = arith.constant 0 : index
    %0 = vector.load %arg2[%c0, %c0_0] : memref<8x128xf32, #tpu.memory_space<vmem>>, vector<8x128xf32>
    %c0_1 = arith.constant 0 : index
    %c0_2 = arith.constant 0 : index
    %1 = vector.load %arg3[%c0_1, %c0_2] : memref<128x128xf32, #tpu.memory_space<vmem>>, vector<128x128xf32>
    %cst = arith.constant dense<0.000000e+00> : vector<8x128xf32>
    %2 = tpu.matmul %0, %1, %cst {dimension_numbers = #tpu.dot_dimension_numbers<[1], [0], [0], [1], [0, 0, 1, 1], [], []>} : vector<8x128xf32>, vector<128x128xf32>, vector<8x128xf32> -> vector<8x128xf32>
    %c0_3 = arith.constant 0 : index
    %c0_4 = arith.constant 0 : index
    %3 = vector.load %arg4[%c0_3, %c0_4] : memref<1x128xf32, #tpu.memory_space<vmem>>, vector<1x128xf32>
    %4 = vector.broadcast %3 : vector<1x128xf32> to vector<8x128xf32>
    %5 = arith.addf %2, %4 : vector<8x128xf32>
    %cst_5 = arith.constant 0.000000e+00 : f32
    %6 = vector.broadcast %cst_5 : f32 to vector<8x128xf32>
    %7 = arith.maximumf %5, %6 : vector<8x128xf32>
    %cst_6 = arith.constant 0.000000e+00 : f32
    %8 = vector.broadcast %cst_6 : f32 to vector<8x128xf32>
    %9 = arith.subf %8, %7 : vector<8x128xf32>
    %10 = math.exp %9 : vector<8x128xf32>
    %c0_7 = arith.constant 0 : index
    %c0_8 = arith.constant 0 : index
    %11 = vector.load %arg5[%c0_7, %c0_8] : memref<8x128xf32, #tpu.memory_space<vmem>>, vector<8x128xf32>
    tpu.vector_store %arg5[%c0_7, %c0_8], %10 {strides = array<i32>} : memref<8x128xf32, #tpu.memory_space<vmem>>, vector<8x128xf32>,
    return
  }
  func.func @transform_0(%arg0: i32, %arg1: i32) -> (i32, i32) {
    %c0_i32 = arith.constant 0 : i32
    %c0_i32_0 = arith.constant 0 : i32
    return %arg0, %c0_i32 : i32, i32
  }
  func.func @transform_1(%arg0: i32, %arg1: i32) -> (i32, i32) {
    %c0_i32 = arith.constant 0 : i32
    %c0_i32_0 = arith.constant 0 : i32
    return %c0_i32, %arg1 : i32, i32
  }
  func.func @transform_2(%arg0: i32, %arg1: i32) -> (i32, i32) {
    %c0_i32 = arith.constant 0 : i32
    %c0_i32_0 = arith.constant 0 : i32
    return %c0_i32, %arg1 : i32, i32
  }
  func.func @transform_3(%arg0: i32, %arg1: i32) -> (i32, i32) {
    %c0_i32 = arith.constant 0 : i32
    return %arg0, %arg1 : i32, i32
  }
}

</mosaic_0001>

<bundles_post_ra>
// kernel: _temporal_decay_padded.1
= control target key start
LH: loop header
LB: loop body
LE: loop exit
PB: predicated region body
PF: predicated region fallthrough
CT: control target
= control target key end

     0   :  { %8 = vsyncpa [#allocation3], 0  ;;  %s232_s0 = inlined_call_operand.hbm [shape: f32[8,128], index: 0, kind: input, shape index: {}]   ;;  %s233_s1 = inlined_call_operand.hbm [shape: f32[128,128], index: 1, kind: input, shape index: {}]   ;;  %s234_s2 = inlined_call_operand.vmem [shape: f32[1,128], index: 2, kind: input, shape index: {}]   ;;  %s235_s3 = inlined_call_operand.hbm [shape: f32[8,128], index: 3, kind: output, shape index: {}]  }
   0x1   :  { %9 = vsyncpa [#allocation6], 0 }
   0x2   :  { %10 = vsyncpa [#allocation4], 0  ;;  %s16_s14 = sshll.u32 %s232_s0, 4  ;;  %s195_s15 = smov [#allocation2]   ;;  %s17_s14 = int_to_ptr.hbm [resolvable:$true] %s16_s14 }
   0x3   :  { %s18_s16 = sshll.u32 %s195_s15, 4  ;;  %s26_s19 = sshll.u32 %s233_s1, 4  ;;  %s19_s16 = int_to_ptr.vmem [resolvable:$true] %s18_s16  ;;  %s27_s19 = int_to_ptr.hbm [resolvable:$true] %s26_s19 }
   0x4   :  { %21 = dma.hbm_to_vmem [thread:$0]  %s17_s14, 128, %s19_s16, [#allocation3]  }
   0x5   :  { %s196_s20 = smov [#allocation5]   ;;  %s197_s22 = smov 128  }
   0x6   :  { %s28_s21 = sshll.u32 %s196_s20, 4  ;;  %s198_s23 = smov 8   ;;  %s29_s21 = int_to_ptr.vmem [resolvable:$true] %s28_s21 }
   0x7   :  { %34 = dma.hbm_to_vmem [thread:$0]  %s27_s19, 2048, %s29_s21, [#allocation6], %s197_s22, %s197_s22, %s198_s23  }
   0x8   :  { %189 = dma.done.wait [#allocation3], 128  }
   0x9   :  { %190 = vsyncadd [#allocation3], 4294967168 }
   0xa   :  { %191 = dma.done.wait [#allocation6], 2048  }
   0xb   :  { %192 = vsyncadd [#allocation6], 4294965248  ;;  %v61_v0 = vld [vmem:[#allocation5 + $0x78] sm:$0xff]  ;;  %v60_v1 = vld [vmem:[#allocation5 + $0x70] sm:$0xff]  ;;  %s199_s24 = smov [#allocation7]   ;;  %s98_s28 = sshll.u32 %s235_s3, 4  ;;  %s99_s28 = int_to_ptr.hbm [resolvable:$true] %s98_s28 }
   0xc   :  { %66 = vmatpush.msra.mxu0 %v61_v0  ;;  %v59_v2 = vld [vmem:[#allocation5 + $0x68] sm:$0xff]  ;;  %v58_v3 = vld [vmem:[#allocation5 + $0x60] sm:$0xff]  ;;  %v57_v4 = vld [vmem:[#allocation5 + $0x58] sm:$0xff]  ;;  %s96_s25 = sshll.u32 %s199_s24, 4  ;;  %s97_s25 = int_to_ptr.vmem [resolvable:$true] %s96_s25 }
   0xd   :  { %v56_v5 = vld [vmem:[#allocation5 + $0x50] sm:$0xff]  ;;  %v55_v6 = vld [vmem:[#allocation5 + $0x48] sm:$0xff]  ;;  %v54_v7 = vld [vmem:[#allocation5 + $0x40] sm:$0xff] }
   0xe   :  { %67 = vmatpush.msra.mxu0 %v60_v1  ;;  %v53_v8 = vld [vmem:[#allocation5 + $0x38] sm:$0xff]  ;;  %v52_v9 = vld [vmem:[#allocation5 + $0x30] sm:$0xff]  ;;  %v51_v10 = vld [vmem:[#allocation5 + $0x28] sm:$0xff] }
   0xf   :  { %v50_v11 = vld [vmem:[#allocation5 + $0x20] sm:$0xff]  ;;  %v49_v12 = vld [vmem:[#allocation5 + $0x18] sm:$0xff]  ;;  %v48_v13 = vld [vmem:[#allocation5 + $0x10] sm:$0xff] }
  0x10   :  { %68 = vmatpush.msra.mxu0 %v59_v2  ;;  %v47_v14 = vld [vmem:[#allocation5 + $0x8] sm:$0xff]  ;;  %v46_v15 = vld [vmem:[#allocation5] sm:$0xff]  ;;  %v45_v16 = vld [vmem:[#allocation2] sm:$0xff] }
  0x11   :  { %v114_v17 = vld [vmem:[%s234_s2] ss:$0 sm:$0xff] }
  0x12   :  { %69 = vmatpush.msra.mxu0 %v58_v3 }
  0x14   :  { %70 = vmatpush.msra.mxu0 %v57_v4 }
  0x16   :  { %71 = vmatpush.msra.mxu0 %v56_v5 }
  0x18   :  { %72 = vmatpush.msra.mxu0 %v55_v6 }
  0x1a   :  { %73 = vmatpush.msra.mxu0 %v54_v7 }
  0x1c   :  { %74 = vmatpush.msra.mxu0 %v53_v8 }
  0x1e   :  { %75 = vmatpush.msra.mxu0 %v52_v9 }
  0x20   :  { %76 = vmatpush.msra.mxu0 %v51_v10 }
  0x22   :  { %77 = vmatpush.msra.mxu0 %v50_v11 }
  0x24   :  { %78 = vmatpush.msra.mxu0 %v49_v12 }
  0x26   :  { %79 = vmatpush.msra.mxu0 %v48_v13 }
  0x28   :  { %80 = vmatpush.msra.mxu0 %v47_v14 }
  0x2a   :  { %81 = vmatpush.msra.mxu0 %v46_v15 }
  0x2b   :  { %82 = vmatmul.f32.vlgmr.msra.gmra.mxu0 %v45_v16 }
  0xa8   :  { %v83_v18 = vpop.f32.mrf.mxu0 }
  0xa9   :  { %v84_v19 = vadd.f32 %v114_v17, %v83_v18 }
  0xab   :  { %v86_v20 = vmax.f32 %v84_v19, 0.0 }
  0xad   :  { %v87_v21 = vsub.f32 0.0, %v86_v20 }
  0xaf   :  { %v88_v22 = vmul.f32 1.442695, %v87_v21 }
  0xb1   :  { %115 = vpow2.f32 %v88_v22 }
  0xb7   :  { %v116_v23 = vpop.eup %115 }
  0xb8   :  { %90 = vst [vmem:[#allocation7] sm:$0xff] %v116_v23 }
  0xb9   :  { %101 = dma.vmem_to_hbm [thread:$0]  %s97_s25, 128, %s99_s28, [#allocation4]  }
  0xba   :  { %193 = dma.done.wait [#allocation4], 128  }
  0xbb   :  { %194 = vsyncadd [#allocation4], 4294967168 }
  0xbc   :  { %106 = vsyncpa [#allocation3], 1 }
  0xbd   :  { %107 = vsyncpa [#allocation6], 1 }
  0xbe   :  { %108 = vsyncpa [#allocation4], 1 }

</bundles_post_ra>
